<compile_context>
chip_gen: v6e
topology: v6e:2x2x1
jax: 0.10.0
libtpu: 0.0.40
codegen_flags: <defaults>
</compile_context>

<pallas_src>
import jax
import jax.numpy as jnp
from jax.experimental import pallas as pl
from jax.experimental.pallas import tpu as pltpu


def _round_up(x, m):
    return (x + m - 1) // m * m


def ffn_kernel(x_ref, w1_ref, b1_ref, w2_ref, b2_ref, o_ref, acc_ref):
    # x_ref: (tm, dm_p)   w1_ref: (dm_p, tf)   b1_ref: (1, tf)
    # w2_ref: (tf, dm_p)  b2_ref: (1, dm_p)    o_ref/acc_ref: (tm, dm_p)
    k = pl.program_id(1)

    # Cast the activation tile to the MXU compute dtype in-kernel; x stays in
    # its native dtype in HBM (no extra wrapper cast pass).
    x = x_ref[...].astype(w1_ref.dtype)

    # First matmul on this d_ff column slice; f32 accumulation on the MXU.
    h = jnp.dot(x, w1_ref[...], preferred_element_type=jnp.float32)
    # Bias + ReLU in f32 (v5e VPU has no bf16 path), single cast feeding MXU#2.
    h = jnp.maximum(h + b1_ref[...], 0.0).astype(w2_ref.dtype)

    # Second matmul on the matching d_ff row slice -> partial (tm, dm) result.
    part = jnp.dot(h, w2_ref[...], preferred_element_type=jnp.float32)

    @pl.when(k == 0)
    def _():
        acc_ref[...] = part

    @pl.when(k > 0)
    def _():
        acc_ref[...] = acc_ref[...] + part

    @pl.when(k == pl.num_programs(1) - 1)
    def _():
        o_ref[...] = (acc_ref[...] + b2_ref[...]).astype(o_ref.dtype)


def prepare_ffn_params(w1, b1, w2, b2, *, compute_dtype=jnp.bfloat16):
    """Cast + lane-pad weights ONCE at model setup (hoisted out of the hot path).

    Weights are stored transposed vs. torch nn.Linear: w1 (d_model, d_ff),
    w2 (d_ff, d_model), so the kernel computes x @ W directly. Zero padding
    of feature dims is numerically exact.
    """
    d_model, d_ff = w1.shape
    dm_p = _round_up(d_model, 128)
    df_p = _round_up(d_ff, 128)
    w1p = jnp.pad(w1.astype(compute_dtype),
                  ((0, dm_p - d_model), (0, df_p - d_ff)))
    w2p = jnp.pad(w2.astype(compute_dtype),
                  ((0, df_p - d_ff), (0, dm_p - d_model)))
    b1p = jnp.pad(b1.astype(jnp.float32), (0, df_p - d_ff)).reshape(1, df_p)
    b2p = jnp.pad(b2.astype(jnp.float32), (0, dm_p - d_model)).reshape(1, dm_p)
    return {
        "w1": w1p, "b1": b1p, "w2": w2p, "b2": b2p,
        "d_model": d_model, "d_ff": d_ff,
        "compute_dtype": jnp.dtype(compute_dtype),
    }


def _vmem_budget_bytes():
    """~75% of this generation's per-core VMEM (≈96 MiB v5e/v6e, ≈48 MiB v7x)."""
    try:
        cap = pltpu.get_tpu_info().vmem_capacity_bytes
    except Exception:  # conservative fallback valid on every generation
        cap = 64 * 1024 * 1024
    return int(0.75 * cap)


def _choose_row_tiling(T, tm_max):
    """Row tile (multiple of 8) + padded row count: minimal padding, >=2 and
    preferably even 'parallel' grid steps so both v7x TensorCores get work."""
    T8 = _round_up(T, 8)
    if T8 <= 8:
        return 8, 8
    n = max(2, pl.cdiv(T8, max(8, tm_max)))
    if n % 2:
        n += 1
    tm8 = _round_up(pl.cdiv(T8, n), 8)
    # Prefer a 128-multiple row tile (fuller MXU passes) only when the extra
    # row padding it introduces stays small (<= ~12.5%).
    tm128 = _round_up(tm8, 128)
    tm = tm128 if (_round_up(T8, tm128) - T8) <= max(T8 // 8, 8) else tm8
    return tm, _round_up(T8, tm)


def _estimate_vmem(tm, dm_p, tf, kt, x_bytes, cd_bytes, out_bytes):
    wbufs = 1 if kt == 1 else 2          # resident weights single-buffered
    return (
        2 * tm * dm_p * x_bytes          # x tile (double buffered)
        + 2 * tm * dm_p * out_bytes      # output tile (double buffered)
        + wbufs * dm_p * tf * cd_bytes   # W1 tile(s)
        + wbufs * tf * dm_p * cd_bytes   # W2 tile(s)
        + wbufs * tf * 4 + dm_p * 4      # b1, b2 (f32)
        + tm * dm_p * 4                  # f32 accumulator scratch
        + tm * tf * (4 + cd_bytes)       # h intermediate (f32 + compute-dtype)
    )


def _choose_ff_tiling(df_p, dm_p, tm, x_bytes, cd_bytes, out_bytes, budget):
    """Largest d_ff tile (multiple of 128 that divides df_p) fitting the budget."""
    n128 = df_p // 128
    for kt in range(1, n128 + 1):
        if n128 % kt:
            continue
        tf = df_p // kt
        need = _estimate_vmem(tm, dm_p, tf, kt, x_bytes, cd_bytes, out_bytes)
        if need <= budget:
            return tf, need
    tf = 128
    return tf, _estimate_vmem(tm, dm_p, tf, df_p // tf,
                              x_bytes, cd_bytes, out_bytes)


def feed_forward(x, params, *, tm_max=512):
    """x: (seq, batch, d_model) -> (seq, batch, d_model)."""
    seq, batch, d_model = x.shape
    assert d_model == params["d_model"]
    d_ff = params["d_ff"]
    w1p, b1p, w2p, b2p = params["w1"], params["b1"], params["w2"], params["b2"]
    dm_p, df_p = w1p.shape

    out_dtype = x.dtype
    x_bytes = jnp.dtype(x.dtype).itemsize
    out_bytes = jnp.dtype(out_dtype).itemsize
    cd_bytes = params["compute_dtype"].itemsize

    T = seq * batch
    tm, T_p = _choose_row_tiling(T, tm_max)

    budget = _vmem_budget_bytes()
    tf, vmem_need = _choose_ff_tiling(df_p, dm_p, tm,
                                      x_bytes, cd_bytes, out_bytes, budget)
    kt = df_p // tf
    grid = (T_p // tm, kt)

    # Row-pad x only (no dtype cast here: the kernel casts the tile in VMEM).
    x2d = jnp.pad(x.reshape(T, d_model), ((0, T_p - T), (0, dm_p - d_model)))

    # Constant-index (resident) blocks get a single VMEM buffer; streamed
    # d_ff-tiled blocks keep the default double buffering.
    resident = {"pipeline_mode": pl.Buffered(1)} if kt == 1 else {}

    vmem_limit = int(min(max(2 * vmem_need, 32 * 1024 * 1024), budget))

    n_row_tiles = T_p // tm
    weight_passes = 1 if kt == 1 else n_row_tiles
    flops = 4 * T * d_model * d_ff                      # two matmuls, true work
    bytes_accessed = int(
        T * d_model * x_bytes
        + weight_passes * 2 * d_model * d_ff * cd_bytes
        + (d_ff + d_model) * 4
        + T * d_model * out_bytes)

    out2d = pl.pallas_call(
        ffn_kernel,
        out_shape=jax.ShapeDtypeStruct((T_p, dm_p), out_dtype),
        grid_spec=pltpu.PrefetchScalarGridSpec(
            num_scalar_prefetch=0,
            grid=grid,
            in_specs=[
                pl.BlockSpec((tm, dm_p), lambda i, k: (i, 0)),              # x
                pl.BlockSpec((dm_p, tf), lambda i, k: (0, k), **resident),  # W1
                pl.BlockSpec((1, tf), lambda i, k: (0, k), **resident),     # b1
                pl.BlockSpec((tf, dm_p), lambda i, k: (k, 0), **resident),  # W2
                pl.BlockSpec((1, dm_p), lambda i, k: (0, 0),
                             pipeline_mode=pl.Buffered(1)),                 # b2
            ],
            out_specs=pl.BlockSpec((tm, dm_p), lambda i, k: (i, 0)),
            scratch_shapes=[pltpu.VMEM((tm, dm_p), jnp.float32)],
        ),
        compiler_params=pltpu.CompilerParams(
            dimension_semantics=("parallel", "arbitrary"),
            vmem_limit_bytes=vmem_limit,
        ),
        cost_estimate=pl.CostEstimate(
            flops=flops, transcendentals=0, bytes_accessed=bytes_accessed),
    )(x2d, w1p, b1p, w2p, b2p)

    return out2d[:T, :d_model].reshape(seq, batch, d_model)


def _init_params(key, d_model, d_ff, dtype=jnp.float32):
    """Deterministic init matching nn.Linear parameter shapes (transposed)."""
    k1, k2, k3, k4 = jax.random.split(key, 4)
    lim1 = 1.0 / jnp.sqrt(d_model)
    lim2 = 1.0 / jnp.sqrt(d_ff)
    w1 = jax.random.uniform(k1, (d_model, d_ff), dtype, -lim1, lim1)
    b1 = jax.random.uniform(k2, (d_ff,), dtype, -lim1, lim1)
    w2 = jax.random.uniform(k3, (d_ff, d_model), dtype, -lim2, lim2)
    b2 = jax.random.uniform(k4, (d_model,), dtype, -lim2, lim2)
    return w1, b1, w2, b2


if __name__ == "__main__":
    key = jax.random.PRNGKey(0)
    kx, kp = jax.random.split(key)

    seq, batch, d_model, d_ff = 8, 2, 32, 64
    x = jax.random.normal(kx, (seq, batch, d_model), jnp.float32)
    w1, b1, w2, b2 = _init_params(kp, d_model, d_ff)

    params = prepare_ffn_params(w1, b1, w2, b2)   # cast/pad once at setup
    out = feed_forward(x, params)
    out = jax.block_until_ready(out)
    assert out.shape == (seq, batch, d_model)

    # Reference with matching precision (bf16 matmul operands, f32 accumulate).
    cd = jnp.bfloat16
    x2 = x.reshape(-1, d_model)
    h_ref = jnp.dot(x2.astype(cd), w1.astype(cd),
                    preferred_element_type=jnp.float32) + b1
    h_ref = jnp.maximum(h_ref, 0.0)
    ref = jnp.dot(h_ref.astype(cd), w2.astype(cd),
                  preferred_element_type=jnp.float32) + b2
    ref = ref.reshape(seq, batch, d_model)
    assert jnp.allclose(out, ref, atol=1e-2, rtol=1e-2)

    # Coarse check against the full-f32 reference (bf16 rounding tolerance).
    ref32 = jnp.maximum(x @ w1 + b1, 0.0) @ w2 + b2
    assert jnp.allclose(out, ref32, atol=7e-2, rtol=7e-2)

    print("KERNEL_OK")
</pallas_src>

<mosaic_0001>
module attributes {stable_mosaic.version = 11 : i64} {
  func.func @ffn_kernel(%arg0: i32, %arg1: i32, %arg2: memref<8x128xf32, #tpu.memory_space<vmem>>, %arg3: memref<128x128xbf16, #tpu.memory_space<vmem>>, %arg4: memref<1x128xf32, #tpu.memory_space<vmem>>, %arg5: memref<128x128xbf16, #tpu.memory_space<vmem>>, %arg6: memref<1x128xf32, #tpu.memory_space<vmem>>, %arg7: memref<8x128xf32, #tpu.memory_space<vmem>>, %arg8: memref<8x128xf32, #tpu.memory_space<vmem>>) attributes {dimension_semantics = [#tpu.dimension_semantics<parallel>, #tpu.dimension_semantics<arbitrary>], iteration_bounds = array<i64: 2, 1>, scalar_prefetch = 0 : i64, scratch_operands = 1 : i64, tpu.core_type = #tpu.core_type<tc>, window_params = [{transform_indices = @transform_0, window_bounds = array<i64: 8, 128>}, {pipeline_mode = #tpu.pipeline_mode<synchronous>, transform_indices = @transform_1, window_bounds = array<i64: 128, 128>}, {pipeline_mode = #tpu.pipeline_mode<synchronous>, transform_indices = @transform_2, window_bounds = array<i64: 1, 128>}, {pipeline_mode = #tpu.pipeline_mode<synchronous>, transform_indices = @transform_3, window_bounds = array<i64: 128, 128>}, {pipeline_mode = #tpu.pipeline_mode<synchronous>, transform_indices = @transform_4, window_bounds = array<i64: 1, 128>}, {transform_indices = @transform_5, window_bounds = array<i64: 8, 128>}]} {
    %c0 = arith.constant 0 : index
    %c0_0 = arith.constant 0 : index
    %0 = vector.load %arg2[%c0, %c0_0] : memref<8x128xf32, #tpu.memory_space<vmem>>, vector<8x128xf32>
    %1 = arith.truncf %0 : vector<8x128xf32> to vector<8x128xbf16>
    %c0_1 = arith.constant 0 : index
    %c0_2 = arith.constant 0 : index
    %2 = vector.load %arg3[%c0_1, %c0_2] : memref<128x128xbf16, #tpu.memory_space<vmem>>, vector<128x128xbf16>
    %cst = arith.constant dense<0.000000e+00> : vector<8x128xf32>
    %3 = tpu.matmul %1, %2, %cst {dimension_numbers = #tpu.dot_dimension_numbers<[1], [0], [0], [1], [0, 0, 1, 1], [], []>} : vector<8x128xbf16>, vector<128x128xbf16>, vector<8x128xf32> -> vector<8x128xf32>
    %c0_3 = arith.constant 0 : index
    %c0_4 = arith.constant 0 : index
    %4 = vector.load %arg4[%c0_3, %c0_4] : memref<1x128xf32, #tpu.memory_space<vmem>>, vector<1x128xf32>
    %5 = vector.broadcast %4 : vector<1x128xf32> to vector<8x128xf32>
    %6 = arith.addf %3, %5 : vector<8x128xf32>
    %cst_5 = arith.constant 0.000000e+00 : f32
    %7 = vector.broadcast %cst_5 : f32 to vector<8x128xf32>
    %8 = arith.maximumf %6, %7 : vector<8x128xf32>
    %9 = arith.truncf %8 : vector<8x128xf32> to vector<8x128xbf16>
    %c0_6 = arith.constant 0 : index
    %c0_7 = arith.constant 0 : index
    %10 = vector.load %arg5[%c0_6, %c0_7] : memref<128x128xbf16, #tpu.memory_space<vmem>>, vector<128x128xbf16>
    %cst_8 = arith.constant dense<0.000000e+00> : vector<8x128xf32>
    %11 = tpu.matmul %9, %10, %cst_8 {dimension_numbers = #tpu.dot_dimension_numbers<[1], [0], [0], [1], [0, 0, 1, 1], [], []>} : vector<8x128xbf16>, vector<128x128xbf16>, vector<8x128xf32> -> vector<8x128xf32>
    %c0_i32 = arith.constant 0 : i32
    %12 = arith.cmpi eq, %arg1, %c0_i32 : i32
    %13 = arith.extui %12 : i1 to i32
    %c0_i32_9 = arith.constant 0 : i32
    %14 = arith.cmpi ne, %13, %c0_i32_9 : i32
    scf.if %14 {
      %c0_14 = arith.constant 0 : index
      %c0_15 = arith.constant 0 : index
      %21 = vector.load %arg8[%c0_14, %c0_15] : memref<8x128xf32, #tpu.memory_space<vmem>>, vector<8x128xf32>
      tpu.vector_store %arg8[%c0_14, %c0_15], %11 {strides = array<i32>} : memref<8x128xf32, #tpu.memory_space<vmem>>, vector<8x128xf32>,
    } else {
    }
    %c0_i32_10 = arith.constant 0 : i32
    %15 = arith.cmpi sgt, %arg1, %c0_i32_10 : i32
    %16 = arith.extui %15 : i1 to i32
    %c0_i32_11 = arith.constant 0 : i32
    %17 = arith.cmpi ne, %16, %c0_i32_11 : i32
    scf.if %17 {
      %c0_14 = arith.constant 0 : index
      %c0_15 = arith.constant 0 : index
      %21 = vector.load %arg8[%c0_14, %c0_15] : memref<8x128xf32, #tpu.memory_space<vmem>>, vector<8x128xf32>
      %22 = arith.addf %21, %11 : vector<8x128xf32>
      %c0_16 = arith.constant 0 : index
      %c0_17 = arith.constant 0 : index
      %23 = vector.load %arg8[%c0_16, %c0_17] : memref<8x128xf32, #tpu.memory_space<vmem>>, vector<8x128xf32>
      tpu.vector_store %arg8[%c0_16, %c0_17], %22 {strides = array<i32>} : memref<8x128xf32, #tpu.memory_space<vmem>>, vector<8x128xf32>,
    } else {
    }
    %c0_i32_12 = arith.constant 0 : i32
    %18 = arith.cmpi eq, %arg1, %c0_i32_12 : i32
    %19 = arith.extui %18 : i1 to i32
    %c0_i32_13 = arith.constant 0 : i32
    %20 = arith.cmpi ne, %19, %c0_i32_13 : i32
    scf.if %20 {
      %c0_14 = arith.constant 0 : index
      %c0_15 = arith.constant 0 : index
      %21 = vector.load %arg8[%c0_14, %c0_15] : memref<8x128xf32, #tpu.memory_space<vmem>>, vector<8x128xf32>
      %c0_16 = arith.constant 0 : index
      %c0_17 = arith.constant 0 : index
      %22 = vector.load %arg6[%c0_16, %c0_17] : memref<1x128xf32, #tpu.memory_space<vmem>>, vector<1x128xf32>
      %23 = vector.broadcast %22 : vector<1x128xf32> to vector<8x128xf32>
      %24 = arith.addf %21, %23 : vector<8x128xf32>
      %c0_18 = arith.constant 0 : index
      %c0_19 = arith.constant 0 : index
      %25 = vector.load %arg7[%c0_18, %c0_19] : memref<8x128xf32, #tpu.memory_space<vmem>>, vector<8x128xf32>
      tpu.vector_store %arg7[%c0_18, %c0_19], %24 {strides = array<i32>} : memref<8x128xf32, #tpu.memory_space<vmem>>, vector<8x128xf32>,
    } else {
    }
    return
  }
  func.func @transform_0(%arg0: i32, %arg1: i32) -> (i32, i32) {
    %c0_i32 = arith.constant 0 : i32
    %c0_i32_0 = arith.constant 0 : i32
    return %arg0, %c0_i32 : i32, i32
  }
  func.func @transform_1(%arg0: i32, %arg1: i32) -> (i32, i32) {
    %c0_i32 = arith.constant 0 : i32
    %c0_i32_0 = arith.constant 0 : i32
    return %c0_i32, %arg1 : i32, i32
  }
  func.func @transform_2(%arg0: i32, %arg1: i32) -> (i32, i32) {
    %c0_i32 = arith.constant 0 : i32
    %c0_i32_0 = arith.constant 0 : i32
    return %c0_i32, %arg1 : i32, i32
  }
  func.func @transform_3(%arg0: i32, %arg1: i32) -> (i32, i32) {
    %c0_i32 = arith.constant 0 : i32
    %c0_i32_0 = arith.constant 0 : i32
    return %arg1, %c0_i32 : i32, i32
  }
  func.func @transform_4(%arg0: i32, %arg1: i32) -> (i32, i32) {
    %c0_i32 = arith.constant 0 : i32
    %c0_i32_0 = arith.constant 0 : i32
    %c0_i32_1 = arith.constant 0 : i32
    return %c0_i32, %c0_i32_0 : i32, i32
  }
  func.func @transform_5(%arg0: i32, %arg1: i32) -> (i32, i32) {
    %c0_i32 = arith.constant 0 : i32
    %c0_i32_0 = arith.constant 0 : i32
    return %arg0, %c0_i32 : i32, i32
  }
}

</mosaic_0001>

<bundles_post_ra>
// kernel: tpu_custom_call.1
= control target key start
LH: loop header
LB: loop body
LE: loop exit
PB: predicated region body
PF: predicated region fallthrough
CT: control target
= control target key end

     0   :  { %s1283_s0 = inlined_call_operand.hbm [shape: f32[16,128], index: 0, kind: input, shape index: {}]   ;;  %s1284_s1 = inlined_call_operand.hbm [shape: bf16[128,128], index: 1, kind: input, shape index: {}]   ;;  %s1285_s2 = inlined_call_operand.vmem [shape: f32[1,128], index: 2, kind: input, shape index: {}]   ;;  %s1286_s3 = inlined_call_operand.hbm [shape: bf16[128,128], index: 3, kind: input, shape index: {}]   ;;  %s1287_s4 = inlined_call_operand.vmem [shape: f32[1,128], index: 4, kind: input, shape index: {}]   ;;  %s1288_s5 = inlined_call_operand.hbm [shape: f32[16,128], index: 5, kind: output, shape index: {}]  }
   0x1   :  { %1292 = sst [smem:[#allocation13_spill]] %s1284_s1 }
   0x2   :  { %10 = vsyncpa [#allocation4], 0 }
   0x3   :  { %12 = vsyncpa [#allocation4 + $0x1], 0 }
   0x4   :  { %13 = vsyncpa [#allocation7], 0 }
   0x5   :  { %14 = vsyncpa [#allocation5], 0 }
   0x6   :  { %16 = vsyncpa [#allocation5 + $0x1], 0  ;;  %s1084_s18 = smov 0   ;;  %s1086_s19 = smov 0  }
   0x7   :  { %s1088_s20 = smov 0   ;;  %s1090_s21 = smov 0  }
   0x8   :  { %s1092_s22 = smov 0   ;;  %s1094_s23 = smov 0  }
   0x9 LB: > { %s683_s24 = sadd.s32 4294967295, %s1044_s23   ;;  %s684_s25 = sadd.s32 4294967294, %s1044_s23   ;;  %s1044_s23 = sphi %s1094_s23, %s22_s23   ;;  %s1040_s22 = sphi %s1092_s22, %s1310_s22   ;;  %s1036_s21 = sphi %s1090_s21, %s1309_s21   ;;  %s1032_s20 = sphi %s1088_s20, %s1308_s20   ;;  %s1028_s19 = sphi %s1086_s19, %s1307_s19   ;;  %s1024_s18 = sphi %s1084_s18, %s1306_s18  }
   0xa   : > { %p54_p0 = scmp.ne.s32.totalorder %s1028_s19, %s1024_s18  ;;  %p1118_p1 = scmp.eq.s32.totalorder %s683_s24, 0 }
   0xb   : > { %p1122_p2 = scmp.eq.s32.totalorder %s683_s24, 1  ;;  %p183_p3 = scmp.eq.s32.totalorder %s684_s25, 1 }
   0xc   : > { %s1293_s26 = scalar_select %p1118_p1, 1, 0 }
   0xd   : > { %p1128_p4 = por %p1118_p1, %p54_p0  ;;  %p685_p5 = scmp.ge.s32.totalorder %s1044_s23, 1 }
   0xe   : > { %p1133_p6 = por %p183_p3, %p54_p0  ;;  %p190_p7 = scmp.lt.s32.totalorder %s1044_s23, 3 }
   0xf   : > { %s1295_s28 = scalar_select %p1128_p4, 1, 0 }
  0x10   : > { %s1296_s29 = scalar_select %p1133_p6, 1, 0 }
  0x11   : > { %p1138_p8 = pnand %p685_p5, %p190_p7  ;;  %s1046_s6 = smov [#allocation6]  }
  0x12   : > { %s204_s7 = sshll.u32 %s1046_s6, 4  ;;  %s1047_s9 = smov [#allocation8]   ;;  %s205_s7 = int_to_ptr.vmem [resolvable:$true] %s204_s7 }
  0x13   : > { %p789_p9 = pneg %p1138_p8  ;;  %s226_s10 = sshll.u32 %s1047_s9, 4  ;;  %s227_s10 = int_to_ptr.vmem [resolvable:$true] %s226_s10 }
  0x14   : > { %s891_s11 = scalar_lea.vmem %s205_s7, 1024  ;;  %p899_p5 = scmp.lt.s32.totalorder %s205_s7, %s205_s7 }
  0x15   : > { %p1147_p11 = pnand %p789_p9, %p1118_p1  ;;  %p892_p13 = scmp.ne.s32.totalorder %s205_s7, %s891_s11 }
  0x16   : > { %p900_p7 = scmp.lt.s32.totalorder %s891_s11, %s891_s11 }
  0x17   : > { %p882_p12 = pneg %p1147_p11 }
  0x18   : > { %p901_p10 = por %p900_p7, %p899_p5 }
  0x19   : > { %p894_p0 = pnand %p892_p13, %p882_p12 }
  0x1b   : > { %p895_p3 = pneg %p894_p0 }
  0x1d   : > { %p902_p9 = pnand %p901_p10, %p895_p3 }
  0x1f   : > { %905 = shalt.err (!%p902_p9)
}
  0x20   : > { %s1048_s12 = smov 64   ;;  %s1049_s13 = smov 4  }
  0x21   : > { %s1299_s1 = sld [smem:[#allocation13_spill]]  ;;  %s917_s16 = scalar_lea.vmem %s227_s10, 1024 }
  0x22   : > { %p918_p6 = scmp.ne.s32.totalorder %s227_s10, %s917_s16  ;;  %p925_p1 = scmp.lt.s32.totalorder %s227_s10, %s227_s10 }
  0x23   : > { %p926_p4 = scmp.lt.s32.totalorder %s917_s16, %s917_s16 }
  0x24   : > { %p920_p13 = pnand %p918_p6, %p882_p12 }
  0x25   : > { %p927_p5 = por %p926_p4, %p925_p1 }
  0x26   : > { %p921_p0 = pneg %p920_p13 }
  0x27   : > { %792 = dma.hbm_to_vmem [thread:$0]  (!%p1147_p11), %s1299_s1, 1024, %s205_s7, [#allocation7], %s1048_s12, %s1048_s12, %s1049_s13  }
  0x28   : > { %p928_p10 = pnand %p927_p5, %p921_p0 }
  0x2a   : > { %931 = shalt.err (!%p928_p10)
}
  0x2b   : > { %795 = dma.hbm_to_vmem [thread:$0]  (!%p1147_p11), %s1286_s3, 1024, %s227_s10, [#allocation7], %s1048_s12, %s1048_s12, %s1049_s13  }
  0x2c   : > { %s34_s25 = sadd.s32 1, %s1040_s22  ;;  %s41_s6 = sadd.s32 1, %s1032_s20 }
  0x2d   : > { %p36_p1 = scmp.ge.s32.totalorder %s34_s25, 2  ;;  %p48_p4 = scmp.ne.s32.totalorder %s1032_s20, %s1028_s19 }
  0x2e   : > { %p49_p6 = scmp.eq.s32.totalorder %s1044_s23, 0  ;;  %p806_p12 = scmp.lt.s32.totalorder %s1044_s23, 2 }
  0x2f   : > { %s1312_s25 = smov (%p36_p1, %s34_s25), 0  ;;  %p1179_p7 = por %p1122_p2, %p48_p4 }
  0x30   : > { %p50_p3 = por %p49_p6, %p48_p4  ;;  %s38_s8 = ssub.s32 %s1040_s22, %s1312_s25 }
  0x31   : > { %s243_s9 = sand.u32 1, %s1032_s20   ;;  %p39_p9 = scmp.eq.s32.totalorder %s38_s8, 0 }
  0x32   : > { %s690_s10 = sshll.u32 %s243_s9, 3  ;;  %s691_s11 = sshll.u32 %s1040_s22, 7 }
  0x33   : > { %s1188_s12 = scalar_select %p39_p9, %s1032_s20, %s41_s6  }
  0x34   : > { %s252_s15 = scalar_lea.hbm %s1283_s0, %s691_s11  ;;  %s247_s16 = scalar_lea.vmem [#allocation3], %s690_s10 }
  0x35   : > { %s254_s17 = sshll.u32 %s247_s16, 4  ;;  %p1195_p11 = pnand %p806_p12, %p50_p3  ;;  %s255_s17 = int_to_ptr.vmem [resolvable:$true] %s254_s17 }
  0x36   : > { %s244_s24 = scalar_lea.sflag [#allocation4], %s243_s9  ;;  %s945_s8 = scalar_lea.vmem %s255_s17, 128 }
  0x37   : > { %p934_p2 = pneg %p1195_p11  ;;  %p946_p13 = scmp.ne.s32.totalorder %s255_s17, %s945_s8 }
  0x38   : > { %s1050_s6 = smov [#allocation3]  }
  0x39   : > { %p948_p0 = pnand %p946_p13, %p934_p2  ;;  %s950_s1 = sshll.u32 %s1050_s6, 4  ;;  %s951_s1 = int_to_ptr.vmem [resolvable:$false] %s950_s1 }
  0x3a   : > { %s952_s11 = scalar_lea.vmem %s951_s1, 256  ;;  %p953_p10 = scmp.lt.s32.totalorder %s255_s17, %s951_s1 }
  0x3b   : > { %p949_p5 = pneg %p948_p0  ;;  %p954_p1 = scmp.lt.s32.totalorder %s952_s11, %s945_s8 }
  0x3d   : > { %p955_p4 = por %p954_p1, %p953_p10 }
  0x3f   : > { %p956_p6 = pnand %p955_p4, %p949_p5 }
  0x41   : > { %959 = shalt.err (!%p956_p6)
}
  0x42   : > { %799 = dma.hbm_to_vmem [thread:$0]  (!%p1195_p11), %s252_s15, 128, %s255_s17, %s244_s24  }
  0x43   : > { %263 = sbr.rel (%p1138_p8) target bundleno = 518 (0x206), region = 40  ;;  %s1206_s9 = sand.u32 (!%p1138_p8), 1, %s1028_s19  }
  0x44   : > { %s693_s10 = sshll.u32 (!%p1138_p8), %s1206_s9, 3  ;;  %s266_s13 = scalar_lea.sflag (!%p1138_p8), [#allocation4], %s1206_s9 }
  0x45   : > { %s1212_s1 = scalar_lea.vmem (!%p1138_p8), [#allocation3], %s693_s10  ;;  %p1302_p12 = scmp.ne.s32.totalorder (!%p1138_p8), %s1295_s28, 0 }
  0x48   : > { %1011 = dma.done.wait (%p1302_p12), %s266_s13, 128  }
  0x49   : > { %1013 = vsyncadd (%p1302_p12), %s266_s13, 4294967168  ;;  %p1303_p3 = scmp.ne.s32.totalorder %s1293_s26, 0 }
  0x4b   : > { %1015 = dma.done.wait (%p1303_p3), [#allocation7], 2048  }
  0x4c   : > { %1017 = vsyncadd (%p1303_p3), [#allocation7], 4294965248  ;;  %v1051_v0 = vmov 0.0   ;;  %vm1052_vm0 = vmmov 0   ;;  %v864_v1 = vld [vmem:[#allocation6 + $0x38] sm:$0xff]   ;;  %v865_v2 = vld [vmem:[#allocation6 + $0x30] sm:$0xff]  }
  0x4d   : > { %737 = vmatprep.subr.bf16.mxu0 %v1051_v0  ;;  %753 = vmatprep.mubr.msk.bf16.mxu0 %vm1052_vm0, %v1051_v0  ;;  %v866_v3 = vld [vmem:[#allocation6 + $0x28] sm:$0xff]   ;;  %v872_v4 = vld [vmem:[#allocation8 + $0x38] sm:$0xff]   ;;  %v867_v5 = vld [vmem:[#allocation6 + $0x20] sm:$0xff]   ;;  %s716_s15 = sshll.u32 %s1036_s21, 7  ;;  %s306_s16 = scalar_lea.vmem [#allocation9], %s693_s10 }
  0x4e   : > { %757 = vmatprep.subr.bf16.mxu1 %v1051_v0  ;;  %773 = vmatprep.mubr.msk.bf16.mxu1 %vm1052_vm0, %v1051_v0  ;;  %v873_v6 = vld [vmem:[#allocation8 + $0x30] sm:$0xff]   ;;  %v868_v7 = vld [vmem:[#allocation6 + $0x18] sm:$0xff]   ;;  %v874_v8 = vld [vmem:[#allocation8 + $0x28] sm:$0xff]   ;;  %s570_s17 = sshll.u32 %s306_s16, 4  ;;  %s1235_s8 = scalar_lea.hbm %s1288_s5, %s716_s15  ;;  %s1237_s17 = int_to_ptr.vmem [resolvable:$true] %s570_s17 }
  0x4f   : > { %738 = vmatpush3.bf16.msra.mxu0 %v864_v1  ;;  %758 = vmatpush3.bf16.msra.mxu1 %v872_v4  ;;  %v869_v9 = vld [vmem:[#allocation6 + $0x10] sm:$0xff]   ;;  %v875_v10 = vld [vmem:[#allocation8 + $0x20] sm:$0xff]   ;;  %v870_v11 = vld [vmem:[#allocation6 + $0x8] sm:$0xff]   ;;  %s557_s6 = scalar_lea.sflag [#allocation5], %s1206_s9  ;;  %s960_s21 = scalar_lea.vmem %s1237_s17, 128 }
  0x50   : > { %739 = vmatprep.subr.bf16.mxu0 %v1051_v0  ;;  %759 = vmatprep.subr.bf16.mxu1 %v1051_v0  ;;  %v876_v12 = vld [vmem:[#allocation8 + $0x18] sm:$0xff]   ;;  %v871_v13 = vld [vmem:[#allocation6] sm:$0xff]   ;;  %v877_v15 = vld [vmem:[#allocation8 + $0x10] sm:$0xff]   ;;  %p961_p8 = scmp.ne.s32.totalorder %s1237_s17, %s960_s21  ;;  %s1053_s11 = smov [#allocation9]  }
  0x51   : > { %v312_v14 = vld [vmem:[%s1212_s1] sm:$0xff]  ;;  %v878_v17 = vld [vmem:[#allocation8 + $0x8] sm:$0xff]   ;;  %v879_v18 = vld [vmem:[#allocation8] sm:$0xff]   ;;  %s964_s10 = sshll.u32 %s1053_s11, 4  ;;  %s965_s10 = int_to_ptr.vmem [resolvable:$false] %s964_s10 }
  0x52   : > { %v313_v16 = vpack.c.bf16 %v312_v14, %v312_v14  ;;  %v697_v19 = vld [vmem:[%s1285_s2] ss:$0 sm:$0xff]  ;;  %p962_p9 = pnand %p961_p8, %p1179_p7  ;;  %s966_s13 = scalar_lea.vmem %s965_s10, 256 }
  0x53   : > { %740 = vmatpush3.bf16.msra.mxu0 %v865_v2  ;;  %760 = vmatpush3.bf16.msra.mxu1 %v873_v6  ;;  %v714_v27 = vld [vmem:[%s1287_s4] ss:$0 sm:$0xff]  ;;  %p967_p2 = scmp.lt.s32.totalorder %s1237_s17, %s965_s10  ;;  %p968_p13 = scmp.lt.s32.totalorder %s966_s13, %s960_s21 }
  0x54   : > { %741 = vmatprep.subr.bf16.mxu0 %v1051_v0  ;;  %761 = vmatprep.subr.bf16.mxu1 %v1051_v0  ;;  %p963_p11 = pneg %p962_p9 }
  0x55   : > { %p969_p0 = por %p968_p13, %p967_p2 }
  0x57   : > { %742 = vmatpush3.bf16.msra.mxu0 %v866_v3  ;;  %762 = vmatpush3.bf16.msra.mxu1 %v874_v8  ;;  %p970_p5 = pnand %p969_p0, %p963_p11 }
  0x58   : > { %743 = vmatprep.subr.bf16.mxu0 %v1051_v0  ;;  %763 = vmatprep.subr.bf16.mxu1 %v1051_v0 }
  0x5b   : > { %744 = vmatpush3.bf16.msra.mxu0 %v867_v5  ;;  %764 = vmatpush3.bf16.msra.mxu1 %v875_v10 }
  0x5c   : > { %745 = vmatprep.subr.bf16.mxu0 %v1051_v0  ;;  %765 = vmatprep.subr.bf16.mxu1 %v1051_v0 }
  0x5f   : > { %746 = vmatpush3.bf16.msra.mxu0 %v868_v7  ;;  %766 = vmatpush3.bf16.msra.mxu1 %v876_v12 }
  0x60   : > { %747 = vmatprep.subr.bf16.mxu0 %v1051_v0  ;;  %767 = vmatprep.subr.bf16.mxu1 %v1051_v0 }
  0x63   : > { %748 = vmatpush3.bf16.msra.mxu0 %v869_v9  ;;  %768 = vmatpush3.bf16.msra.mxu1 %v877_v15 }
  0x64   : > { %749 = vmatprep.subr.bf16.mxu0 %v1051_v0  ;;  %769 = vmatprep.subr.bf16.mxu1 %v1051_v0 }
  0x67   : > { %750 = vmatpush3.bf16.msra.mxu0 %v870_v11  ;;  %770 = vmatpush3.bf16.msra.mxu1 %v878_v17 }
  0x68   : > { %751 = vmatprep.subr.bf16.mxu0 %v1051_v0  ;;  %771 = vmatprep.subr.bf16.mxu1 %v1051_v0 }
  0x6b   : > { %752 = vmatpush3.bf16.msra.mxu0 %v871_v13  ;;  %772 = vmatpush3.bf16.msra.mxu1 %v879_v18 }
  0x6e   : > { %754 = vmatmul.mubr.bf16.vlgmr.msra.gmra.mxu0 %v313_v16 }
 0x12e   : > { %v419_v20 = vpop.f32.mrf.mxu0 }
 0x12f   : > { %v420_v21 = vadd.f32 %v697_v19, %v419_v20 }
 0x130   : > { %v755_v22 = vpop.f32.mrf.mxu0 }
 0x131   : > { %v425_v23 = vmax.f32 %v420_v21, 0.0 }
 0x132   : > { %v422_v24 = vpop.f32.mrf.mxu0 }
 0x133   : > { %v426_v25 = vpack.c.bf16 %v425_v23, %v425_v23 }
 0x134   : > { %v756_v26 = vpop.f32.mrf.mxu0 }
 0x135   : > { %774 = vmatmul.mubr.bf16.vlgmr.msra.gmra.mxu1 %v426_v25 }
 0x1f5   : > { %v525_v28 = vpop.f32.mrf.mxu1 }
 0x1f6   : > { %v554_v29 = vadd.f32 %v714_v27, %v525_v28 }
 0x1f7   : > { %v775_v30 = vpop.f32.mrf.mxu1 }
 0x1f8   : > { %555 = vst [vmem:[%s306_s16] sm:$0xff] %v554_v29 }
 0x1f9   : > { %v528_v31 = vpop.f32.mrf.mxu1 }
 0x1fa   : > { %973 = shalt.err (!%p970_p5)
}
 0x1fb   : > { %s974_s1 = scalar_lea.hbm %s1235_s8, 128  ;;  %s978_s28 = scalar_lea.hbm %s1288_s5, 256 }
 0x1fc   : > { %p975_p10 = scmp.ne.s32.totalorder %s1235_s8, %s974_s1  ;;  %p979_p6 = scmp.lt.s32.totalorder %s1235_s8, %s1288_s5 }
 0x1fd   : > { %p980_p12 = scmp.lt.s32.totalorder %s978_s28, %s974_s1 }
 0x1fe   : > { %p976_p1 = pnand %p975_p10, %p1179_p7 }
 0x1ff   : > { %p981_p3 = por %p980_p12, %p979_p6 }
 0x200   : > { %p977_p4 = pneg %p976_p1 }
 0x202   : > { %p982_p8 = pnand %p981_p3, %p977_p4 }
 0x204   : > { %985 = shalt.err (!%p982_p8)
}
 0x205   : > { %787 = dma.vmem_to_hbm [thread:$0]  (%p1179_p7), %s1237_s17, 128, %s1235_s8, %s557_s6   ;;  %v776_v32 = vpop.f32.mrf.mxu1 }
 0x206 PF: > { %s582_s15 = sand.u32 1, %s1024_s18   ;;  %p1304_p9 = scmp.ne.s32.totalorder %s1296_s29, 0 }
 0x207   : > { %p1305_p11 = scmp.ge.s32.totalorder %s1044_s23, 2  ;;  %s583_s16 = scalar_lea.sflag [#allocation5], %s582_s15 }
 0x209   : > { %p801_p2 = pnand %p1305_p11, %p1304_p9 }
 0x20b   : > { %p802_p13 = pneg %p801_p2 }
 0x20d   : > { %1019 = dma.done.wait (%p802_p13), %s583_s16, 128  }
 0x20e   : > { %1021 = vsyncadd (%p802_p13), %s583_s16, 4294967168  ;;  %s22_s23 = sadd.s32 1, %s1044_s23   ;;  %s1306_s18 = smov %s1028_s19 }
 0x20f   : > { %p19_p0 = scmp.ge.s32.totalorder %s22_s23, 4   ;;  %s1307_s19 = smov %s1032_s20 }
 0x210   : > { %s1308_s20 = smov %s1188_s12  ;;  %s1309_s21 = smov %s1040_s22 }
 0x211   : > { %s1310_s22 = smov %s1312_s25  ;;  %21 = sbr.rel (!%p19_p0) target bundleno = 9 (0x9), region = 110 }
 0x216   :  { %588 = vsyncpa [#allocation4], 1 }
 0x217   :  { %590 = vsyncpa [#allocation4 + $0x1], 1 }
 0x218   :  { %591 = vsyncpa [#allocation7], 1 }
 0x219   :  { %592 = vsyncpa [#allocation5], 1 }
 0x21a   :  { %594 = vsyncpa [#allocation5 + $0x1], 1 }

</bundles_post_ra>
